<compile_context>
chip_gen: v7x
topology: tpu7x:2x2x1
jax: 0.10.0
libtpu: 0.0.40
codegen_flags: <defaults>
</compile_context>

<pallas_src>
import jax
import jax.numpy as jnp
from jax.experimental import pallas as pl
from jax.experimental.pallas import tpu as pltpu

# Layer widths of the reference module: input_dim -> 128 -> 256 -> 512 -> output_dim
HIDDEN_DIMS = (128, 256, 512)


def _round_up(x, m):
    return (x + m - 1) // m * m


def _cdiv(a, b):
    return -(-a // b)


def _device_defaults():
    """Return (block_b cap, min grid steps, vmem limit bytes) per TPU generation."""
    try:
        kind = jax.devices()[0].device_kind.lower()
    except Exception:
        kind = ""
    if "v7" in kind or "tpu7" in kind:
        # 2 TensorCores/chip -> want >=2 grid steps; 64 MiB physical VMEM per TC.
        return 1024, 2, 48 * 1024 * 1024
    if "v6" in kind:
        # Bigger tiles amortize the ~0.35 us per-grid-step overhead at 918 TF/s.
        return 1024, 1, 64 * 1024 * 1024
    # v5e / unknown: MXU-throughput bound, 512-row tiles already amortize overhead;
    # keep explicit 32 MB (default scoped VMEM is only 16 MB).
    return 512, 1, 32 * 1024 * 1024


def _choose_block_b(B, cap, min_grid):
    """Balanced batch tile: minimize padded rows, honor cap and min grid steps."""
    eff_min_grid = min(min_grid, max(1, B // 8))     # don't split tiny batches
    n_tiles = max(_cdiv(B, cap), eff_min_grid)
    return _round_up(_cdiv(B, n_tiles), 8)           # sublane multiple


def _generator_kernel(x_ref,
                      w1, b1, w2, b2, w3, b3, w4, b4,
                      o_ref):
    """Fused Generator: (Linear+ReLU) x3, Linear, Tanh.  bf16 MXU, f32 accumulate."""

    def linear(h_bf16, w_ref, b_ref):
        # bf16 operands -> MXU peak path; f32 accumulation; f32 bias add.
        return jnp.dot(h_bf16, w_ref[...],
                       preferred_element_type=jnp.float32) + b_ref[...]

    h = jnp.maximum(linear(x_ref[...], w1, b1), 0.0)            # x already bf16
    h = jnp.maximum(linear(h.astype(jnp.bfloat16), w2, b2), 0.0)
    h = jnp.maximum(linear(h.astype(jnp.bfloat16), w3, b3), 0.0)
    o_ref[...] = jnp.tanh(linear(h.astype(jnp.bfloat16), w4, b4)).astype(o_ref.dtype)


def generator_forward(x, params, *, block_b=None):
    """Run the fused Generator kernel.

    x: (B, input_dim) float32
    params: list of 4 tuples (W, b) with W shaped (in, out), b shaped (1, out),
            stored in float32 (PyTorch-equivalent values).
    """
    B, input_dim = x.shape
    output_dim = params[-1][0].shape[1]

    # Latent K rounded only to the sublane multiple (NOT to 128); output kept
    # lane-dense at >=128 so stores are unmasked full-width vst.
    in_pad = _round_up(input_dim, 8)
    out_pad = _round_up(max(output_dim, 128), 128)

    cap, min_grid, vmem_limit = _device_defaults()
    if block_b is None:
        block_b = _choose_block_b(B, cap, min_grid)
    B_pad = _round_up(B, block_b)
    grid = (B_pad // block_b,)

    # Pad + cast the input once, as bf16 (the MXU consumes bf16 anyway):
    # halves x DMA bytes and the x double-buffer VMEM.
    x_p = jnp.zeros((B_pad, in_pad), jnp.bfloat16).at[:B, :input_dim].set(
        x.astype(jnp.bfloat16))

    (w1, b1), (w2, b2), (w3, b3), (w4, b4) = params
    # bf16 weights (zero-padded where dims were padded); f32 biases.
    w1_p = jnp.zeros((in_pad, w1.shape[1]), jnp.bfloat16).at[:input_dim, :].set(
        w1.astype(jnp.bfloat16))
    w4_p = jnp.zeros((w4.shape[0], out_pad), jnp.bfloat16).at[:, :output_dim].set(
        w4.astype(jnp.bfloat16))
    b4_p = jnp.zeros((1, out_pad), jnp.float32).at[:, :output_dim].set(
        b4.astype(jnp.float32))

    kernel_params = [
        (w1_p, b1.astype(jnp.float32)),
        (w2.astype(jnp.bfloat16), b2.astype(jnp.float32)),
        (w3.astype(jnp.bfloat16), b3.astype(jnp.float32)),
        (w4_p, b4_p),
    ]

    flat_args = [x_p]
    in_specs = [pl.BlockSpec((block_b, in_pad), lambda i: (i, 0))]
    for w, b in kernel_params:
        flat_args.append(w)
        flat_args.append(b)
        # Full-array blocks + constant index maps: weights/biases stay resident
        # in VMEM across grid steps (no per-step re-DMA).
        in_specs.append(pl.BlockSpec(w.shape, lambda i: (0, 0)))
        in_specs.append(pl.BlockSpec(b.shape, lambda i: (0, 0)))

    out_specs = pl.BlockSpec((block_b, out_pad), lambda i: (i, 0))

    # Advisory cost estimate for the XLA scheduler.
    flops = 2 * B_pad * (in_pad * 128 + 128 * 256 + 256 * 512 + 512 * out_pad)
    bytes_accessed = (
        sum(int(w.size) * w.dtype.itemsize + int(b.size) * 4 for w, b in kernel_params)
        + B_pad * in_pad * 2 + B_pad * out_pad * 4)
    cost = pl.CostEstimate(flops=flops,
                           transcendentals=B_pad * out_pad,
                           bytes_accessed=bytes_accessed)

    out = pl.pallas_call(
        _generator_kernel,
        out_shape=jax.ShapeDtypeStruct((B_pad, out_pad), jnp.float32),
        grid_spec=pltpu.PrefetchScalarGridSpec(
            num_scalar_prefetch=0,
            grid=grid,
            in_specs=in_specs,
            out_specs=out_specs,
        ),
        compiler_params=pltpu.CompilerParams(
            dimension_semantics=("parallel",),   # megacore sharding of batch tiles
            vmem_limit_bytes=vmem_limit,
        ),
        cost_estimate=cost,
    )(*flat_args)

    return out[:B, :output_dim]


def init_params(key, input_dim, output_dim):
    """Deterministic synthetic init matching nn.Linear shapes.

    PyTorch nn.Linear(in, out) holds weight (out, in), bias (out,). We build
    the same values then transpose the weight to (in, out) for the kernel.
    """
    dims = (input_dim,) + HIDDEN_DIMS + (output_dim,)
    params = []
    for li in range(len(dims) - 1):
        fan_in, fan_out = dims[li], dims[li + 1]
        key, kw, kb = jax.random.split(key, 3)
        bound = 1.0 / jnp.sqrt(jnp.float32(fan_in))
        w_torch = jax.random.uniform(kw, (fan_out, fan_in), jnp.float32, -bound, bound)
        b_torch = jax.random.uniform(kb, (fan_out,), jnp.float32, -bound, bound)
        params.append((w_torch.T, b_torch.reshape(1, fan_out)))
    return params


def reference_forward(x, params):
    """Plain-JAX reference with the same bf16-matmul / f32-accumulate semantics."""
    # NOTE: bf16 operands diverge from PyTorch's f32 nn.Linear at the ~1e-3 level,
    # which is acceptable for a GAN generator (tanh output in [-1, 1]).
    h = x.astype(jnp.bfloat16)
    n = len(params)
    for i, (w, b) in enumerate(params):
        z = jnp.dot(h, w.astype(jnp.bfloat16),
                    preferred_element_type=jnp.float32) + b.astype(jnp.float32)
        if i < n - 1:
            h = jnp.maximum(z, 0.0).astype(jnp.bfloat16)
        else:
            h = jnp.tanh(z)
    return h


if __name__ == "__main__":
    key = jax.random.PRNGKey(0)
    input_dim = 32     # latent dim
    output_dim = 64    # small generator output
    batch = 8

    kparams, kx = jax.random.split(key)
    params = init_params(kparams, input_dim, output_dim)
    x = jax.random.normal(kx, (batch, input_dim), jnp.float32)

    out = jax.block_until_ready(generator_forward(x, params))
    ref = jax.block_until_ready(reference_forward(x, params))

    assert out.shape == (batch, output_dim), out.shape
    assert jnp.allclose(out, ref, atol=2e-3, rtol=2e-3), (
        f"max abs err {jnp.max(jnp.abs(out - ref))}")

    print("KERNEL_OK")
</pallas_src>

<mosaic_0001>
module attributes {stable_mosaic.version = 11 : i64} {
  func.func @_generator_kernel(%arg0: i32, %arg1: memref<8x32xbf16, #tpu.memory_space<vmem>>, %arg2: memref<32x128xbf16, #tpu.memory_space<vmem>>, %arg3: memref<1x128xf32, #tpu.memory_space<vmem>>, %arg4: memref<128x256xbf16, #tpu.memory_space<vmem>>, %arg5: memref<1x256xf32, #tpu.memory_space<vmem>>, %arg6: memref<256x512xbf16, #tpu.memory_space<vmem>>, %arg7: memref<1x512xf32, #tpu.memory_space<vmem>>, %arg8: memref<512x128xbf16, #tpu.memory_space<vmem>>, %arg9: memref<1x128xf32, #tpu.memory_space<vmem>>, %arg10: memref<8x128xf32, #tpu.memory_space<vmem>>) attributes {dimension_semantics = [#tpu.dimension_semantics<parallel>], iteration_bounds = array<i64: 1>, scalar_prefetch = 0 : i64, scratch_operands = 0 : i64, tpu.core_type = #tpu.core_type<tc>, window_params = [{transform_indices = @transform_0, window_bounds = array<i64: 8, 32>}, {pipeline_mode = #tpu.pipeline_mode<synchronous>, transform_indices = @transform_1, window_bounds = array<i64: 32, 128>}, {pipeline_mode = #tpu.pipeline_mode<synchronous>, transform_indices = @transform_2, window_bounds = array<i64: 1, 128>}, {pipeline_mode = #tpu.pipeline_mode<synchronous>, transform_indices = @transform_3, window_bounds = array<i64: 128, 256>}, {pipeline_mode = #tpu.pipeline_mode<synchronous>, transform_indices = @transform_4, window_bounds = array<i64: 1, 256>}, {pipeline_mode = #tpu.pipeline_mode<synchronous>, transform_indices = @transform_5, window_bounds = array<i64: 256, 512>}, {pipeline_mode = #tpu.pipeline_mode<synchronous>, transform_indices = @transform_6, window_bounds = array<i64: 1, 512>}, {pipeline_mode = #tpu.pipeline_mode<synchronous>, transform_indices = @transform_7, window_bounds = array<i64: 512, 128>}, {pipeline_mode = #tpu.pipeline_mode<synchronous>, transform_indices = @transform_8, window_bounds = array<i64: 1, 128>}, {transform_indices = @transform_9, window_bounds = array<i64: 8, 128>}]} {
    %c0 = arith.constant 0 : index
    %c0_0 = arith.constant 0 : index
    %0 = vector.load %arg1[%c0, %c0_0] : memref<8x32xbf16, #tpu.memory_space<vmem>>, vector<8x32xbf16>
    %c0_1 = arith.constant 0 : index
    %c0_2 = arith.constant 0 : index
    %1 = vector.load %arg2[%c0_1, %c0_2] : memref<32x128xbf16, #tpu.memory_space<vmem>>, vector<32x128xbf16>
    %cst = arith.constant dense<0.000000e+00> : vector<8x128xf32>
    %2 = tpu.matmul %0, %1, %cst {dimension_numbers = #tpu.dot_dimension_numbers<[1], [0], [0], [1], [0, 0, 1, 1], [], []>} : vector<8x32xbf16>, vector<32x128xbf16>, vector<8x128xf32> -> vector<8x128xf32>
    %c0_3 = arith.constant 0 : index
    %c0_4 = arith.constant 0 : index
    %3 = vector.load %arg3[%c0_3, %c0_4] : memref<1x128xf32, #tpu.memory_space<vmem>>, vector<1x128xf32>
    %4 = vector.broadcast %3 : vector<1x128xf32> to vector<8x128xf32>
    %5 = arith.addf %2, %4 : vector<8x128xf32>
    %cst_5 = arith.constant 0.000000e+00 : f32
    %6 = vector.broadcast %cst_5 : f32 to vector<8x128xf32>
    %7 = arith.maximumf %5, %6 : vector<8x128xf32>
    %8 = arith.truncf %7 : vector<8x128xf32> to vector<8x128xbf16>
    %c0_6 = arith.constant 0 : index
    %c0_7 = arith.constant 0 : index
    %9 = vector.load %arg4[%c0_6, %c0_7] : memref<128x256xbf16, #tpu.memory_space<vmem>>, vector<128x256xbf16>
    %cst_8 = arith.constant dense<0.000000e+00> : vector<8x256xf32>
    %10 = tpu.matmul %8, %9, %cst_8 {dimension_numbers = #tpu.dot_dimension_numbers<[1], [0], [0], [1], [0, 0, 1, 1], [], []>} : vector<8x128xbf16>, vector<128x256xbf16>, vector<8x256xf32> -> vector<8x256xf32>
    %c0_9 = arith.constant 0 : index
    %c0_10 = arith.constant 0 : index
    %11 = vector.load %arg5[%c0_9, %c0_10] : memref<1x256xf32, #tpu.memory_space<vmem>>, vector<1x256xf32>
    %12 = vector.broadcast %11 : vector<1x256xf32> to vector<8x256xf32>
    %13 = arith.addf %10, %12 : vector<8x256xf32>
    %cst_11 = arith.constant 0.000000e+00 : f32
    %14 = vector.broadcast %cst_11 : f32 to vector<8x256xf32>
    %15 = arith.maximumf %13, %14 : vector<8x256xf32>
    %16 = arith.truncf %15 : vector<8x256xf32> to vector<8x256xbf16>
    %c0_12 = arith.constant 0 : index
    %c0_13 = arith.constant 0 : index
    %17 = vector.load %arg6[%c0_12, %c0_13] : memref<256x512xbf16, #tpu.memory_space<vmem>>, vector<256x512xbf16>
    %cst_14 = arith.constant dense<0.000000e+00> : vector<8x512xf32>
    %18 = tpu.matmul %16, %17, %cst_14 {dimension_numbers = #tpu.dot_dimension_numbers<[1], [0], [0], [1], [0, 0, 1, 1], [], []>} : vector<8x256xbf16>, vector<256x512xbf16>, vector<8x512xf32> -> vector<8x512xf32>
    %c0_15 = arith.constant 0 : index
    %c0_16 = arith.constant 0 : index
    %19 = vector.load %arg7[%c0_15, %c0_16] : memref<1x512xf32, #tpu.memory_space<vmem>>, vector<1x512xf32>
    %20 = vector.broadcast %19 : vector<1x512xf32> to vector<8x512xf32>
    %21 = arith.addf %18, %20 : vector<8x512xf32>
    %cst_17 = arith.constant 0.000000e+00 : f32
    %22 = vector.broadcast %cst_17 : f32 to vector<8x512xf32>
    %23 = arith.maximumf %21, %22 : vector<8x512xf32>
    %24 = arith.truncf %23 : vector<8x512xf32> to vector<8x512xbf16>
    %c0_18 = arith.constant 0 : index
    %c0_19 = arith.constant 0 : index
    %25 = vector.load %arg8[%c0_18, %c0_19] : memref<512x128xbf16, #tpu.memory_space<vmem>>, vector<512x128xbf16>
    %cst_20 = arith.constant dense<0.000000e+00> : vector<8x128xf32>
    %26 = tpu.matmul %24, %25, %cst_20 {dimension_numbers = #tpu.dot_dimension_numbers<[1], [0], [0], [1], [0, 0, 1, 1], [], []>} : vector<8x512xbf16>, vector<512x128xbf16>, vector<8x128xf32> -> vector<8x128xf32>
    %c0_21 = arith.constant 0 : index
    %c0_22 = arith.constant 0 : index
    %27 = vector.load %arg9[%c0_21, %c0_22] : memref<1x128xf32, #tpu.memory_space<vmem>>, vector<1x128xf32>
    %28 = vector.broadcast %27 : vector<1x128xf32> to vector<8x128xf32>
    %29 = arith.addf %26, %28 : vector<8x128xf32>
    %30 = math.tanh %29 : vector<8x128xf32>
    %c0_23 = arith.constant 0 : index
    %c0_24 = arith.constant 0 : index
    %31 = vector.load %arg10[%c0_23, %c0_24] : memref<8x128xf32, #tpu.memory_space<vmem>>, vector<8x128xf32>
    tpu.vector_store %arg10[%c0_23, %c0_24], %30 {strides = array<i32>} : memref<8x128xf32, #tpu.memory_space<vmem>>, vector<8x128xf32>,
    return
  }
  func.func @transform_0(%arg0: i32) -> (i32, i32) {
    %c0_i32 = arith.constant 0 : i32
    %c0_i32_0 = arith.constant 0 : i32
    return %arg0, %c0_i32 : i32, i32
  }
  func.func @transform_1(%arg0: i32) -> (i32, i32) {
    %c0_i32 = arith.constant 0 : i32
    %c0_i32_0 = arith.constant 0 : i32
    %c0_i32_1 = arith.constant 0 : i32
    return %c0_i32, %c0_i32_0 : i32, i32
  }
  func.func @transform_2(%arg0: i32) -> (i32, i32) {
    %c0_i32 = arith.constant 0 : i32
    %c0_i32_0 = arith.constant 0 : i32
    %c0_i32_1 = arith.constant 0 : i32
    return %c0_i32, %c0_i32_0 : i32, i32
  }
  func.func @transform_3(%arg0: i32) -> (i32, i32) {
    %c0_i32 = arith.constant 0 : i32
    %c0_i32_0 = arith.constant 0 : i32
    %c0_i32_1 = arith.constant 0 : i32
    return %c0_i32, %c0_i32_0 : i32, i32
  }
  func.func @transform_4(%arg0: i32) -> (i32, i32) {
    %c0_i32 = arith.constant 0 : i32
    %c0_i32_0 = arith.constant 0 : i32
    %c0_i32_1 = arith.constant 0 : i32
    return %c0_i32, %c0_i32_0 : i32, i32
  }
  func.func @transform_5(%arg0: i32) -> (i32, i32) {
    %c0_i32 = arith.constant 0 : i32
    %c0_i32_0 = arith.constant 0 : i32
    %c0_i32_1 = arith.constant 0 : i32
    return %c0_i32, %c0_i32_0 : i32, i32
  }
  func.func @transform_6(%arg0: i32) -> (i32, i32) {
    %c0_i32 = arith.constant 0 : i32
    %c0_i32_0 = arith.constant 0 : i32
    %c0_i32_1 = arith.constant 0 : i32
    return %c0_i32, %c0_i32_0 : i32, i32
  }
  func.func @transform_7(%arg0: i32) -> (i32, i32) {
    %c0_i32 = arith.constant 0 : i32
    %c0_i32_0 = arith.constant 0 : i32
    %c0_i32_1 = arith.constant 0 : i32
    return %c0_i32, %c0_i32_0 : i32, i32
  }
  func.func @transform_8(%arg0: i32) -> (i32, i32) {
    %c0_i32 = arith.constant 0 : i32
    %c0_i32_0 = arith.constant 0 : i32
    %c0_i32_1 = arith.constant 0 : i32
    return %c0_i32, %c0_i32_0 : i32, i32
  }
  func.func @transform_9(%arg0: i32) -> (i32, i32) {
    %c0_i32 = arith.constant 0 : i32
    %c0_i32_0 = arith.constant 0 : i32
    return %arg0, %c0_i32 : i32, i32
  }
}

</mosaic_0001>

<bundles_post_ra>
// kernel: tpu_custom_call.1
= control target key start
LH: loop header
LB: loop body
LE: loop exit
PB: predicated region body
PF: predicated region fallthrough
CT: control target
= control target key end

     0   :  { %14 = vsyncpa [#allocation3], 0  ;;  %s1840_s0 = inlined_call_operand.hbm [shape: bf16[8,32], index: 0, kind: input, shape index: {}]   ;;  %s1841_s1 = inlined_call_operand.hbm [shape: bf16[32,128], index: 1, kind: input, shape index: {}]   ;;  %s1842_s2 = inlined_call_operand.vmem [shape: f32[1,128], index: 2, kind: input, shape index: {}]   ;;  %s1843_s3 = inlined_call_operand.hbm [shape: bf16[128,256], index: 3, kind: input, shape index: {}]   ;;  %s1844_s4 = inlined_call_operand.vmem [shape: f32[1,256], index: 4, kind: input, shape index: {}]   ;;  %s1845_s5 = inlined_call_operand.hbm [shape: bf16[256,512], index: 5, kind: input, shape index: {}]   ;;  %s1846_s6 = inlined_call_operand.vmem [shape: f32[1,512], index: 6, kind: input, shape index: {}]   ;;  %s1847_s7 = inlined_call_operand.hbm [shape: bf16[512,128], index: 7, kind: input, shape index: {}]   ;;  %s1848_s8 = inlined_call_operand.vmem [shape: f32[1,128], index: 8, kind: input, shape index: {}]   ;;  %s1849_s9 = inlined_call_operand.hbm [shape: f32[8,128], index: 9, kind: output, shape index: {}]  }
   0x1   :  { %15 = vsyncpa [#allocation6], 0 }
   0x2   :  { %16 = vsyncpa [#allocation9], 0 }
   0x3   :  { %17 = vsyncpa [#allocation4], 0  ;;  %s1664_s30 = smov [#allocation5]   ;;  %s1524_s13 = scalar_lea.hbm %s1841_s1, 256 }
   0x4   :  { %s33_s10 = sshll.u32 %s1664_s30, 4  ;;  %p1525_p0 = scmp.ne.s32.totalorder %s1841_s1, %s1524_s13  ;;  %s34_s10 = int_to_ptr.vmem [resolvable:$true] %s33_s10 }
   0x5   :  { %p1528_p1 = scmp.lt.u32.totalorder %s1524_s13, %s1841_s1 }
   0x7   :  { %p1530_p2 = pnand %p1528_p1, %p1525_p0 }
   0x9   :  { %1533 = shalt.err (!%p1530_p2)
}
   0xa   :  { %s1534_s18 = scalar_lea.vmem %s34_s10, 256  ;;  %p1539_p4 = scmp.lt.s32.totalorder %s34_s10, %s34_s10 }
   0xb   :  { %p1535_p3 = scmp.ne.s32.totalorder %s34_s10, %s1534_s18  ;;  %p1540_p5 = scmp.lt.s32.totalorder %s1534_s18, %s1534_s18 }
   0xd   :  { %p1541_p6 = por %p1540_p5, %p1539_p4 }
   0xf   :  { %p1542_p7 = pnand %p1541_p6, %p1535_p3 }
  0x11   :  { %1545 = shalt.err (!%p1542_p7)
}
  0x12   :  { %s1665_s19 = smov 64   ;;  %s1666_s20 = smov 4  }
  0x13   :  { %39 = dma.hbm_to_vmem [thread:$0]  %s1841_s1, 256, %s34_s10, [#allocation6], %s1665_s19, %s1665_s19, %s1666_s20  }
  0x14   :  { %s1667_s23 = smov [#allocation8]   ;;  %s1546_s27 = scalar_lea.hbm %s1845_s5, 8192 }
  0x15   :  { %s61_s24 = sshll.u32 %s1667_s23, 4  ;;  %p1547_p8 = scmp.ne.s32.totalorder %s1845_s5, %s1546_s27  ;;  %s62_s24 = int_to_ptr.vmem [resolvable:$true] %s61_s24 }
  0x16   :  { %p1550_p9 = scmp.lt.u32.totalorder %s1546_s27, %s1845_s5 }
  0x18   :  { %p1552_p10 = pnand %p1550_p9, %p1547_p8 }
  0x1a   :  { %1555 = shalt.err (!%p1552_p10)
}
  0x1b   :  { %s1556_s12 = scalar_lea.vmem %s62_s24, 8192  ;;  %p1561_p12 = scmp.lt.s32.totalorder %s62_s24, %s62_s24 }
  0x1c   :  { %p1557_p11 = scmp.ne.s32.totalorder %s62_s24, %s1556_s12  ;;  %p1562_p13 = scmp.lt.s32.totalorder %s1556_s12, %s1556_s12 }
  0x1e   :  { %p1563_p0 = por %p1562_p13, %p1561_p12 }
  0x20   :  { %p1564_p1 = pnand %p1563_p0, %p1557_p11 }
  0x22   :  { %1567 = shalt.err (!%p1564_p1)
}
  0x23   :  { %s1668_s1 = smov 256   ;;  %s1669_s10 = smov 16  }
  0x24   :  { %67 = dma.hbm_to_vmem [thread:$0]  %s1845_s5, 8192, %s62_s24, [#allocation9], %s1668_s1, %s1668_s1, %s1669_s10  }
  0x25   :  { %s1670_s15 = smov [#allocation2]   ;;  %s1671_s17 = smov [#allocation7]  }
  0x26   :  { %s24_s16 = sshll.u32 %s1670_s15, 4  ;;  %s47_s18 = sshll.u32 %s1671_s17, 4  ;;  %s25_s16 = int_to_ptr.vmem [resolvable:$true] %s24_s16  ;;  %s1756_s18 = int_to_ptr.vmem [resolvable:$true] %s47_s18 }
  0x27   :  { %s1568_s23 = scalar_lea.hbm %s1840_s0, 64 }
  0x28   :  { %p1569_p2 = scmp.ne.s32.totalorder %s1840_s0, %s1568_s23  ;;  %p1572_p3 = scmp.lt.u32.totalorder %s1568_s23, %s1840_s0 }
  0x2a   :  { %p1574_p4 = pnand %p1572_p3, %p1569_p2 }
  0x2c   :  { %1577 = shalt.err (!%p1574_p4)
}
  0x2d   :  { %s1578_s5 = scalar_lea.vmem %s25_s16, 64  ;;  %p1583_p6 = scmp.lt.s32.totalorder %s25_s16, %s25_s16 }
  0x2e   :  { %p1579_p5 = scmp.ne.s32.totalorder %s25_s16, %s1578_s5  ;;  %p1584_p7 = scmp.lt.s32.totalorder %s1578_s5, %s1578_s5 }
  0x30   :  { %p1585_p8 = por %p1584_p7, %p1583_p6 }
  0x32   :  { %p1586_p9 = pnand %p1585_p8, %p1579_p5 }
  0x34   :  { %1589 = shalt.err (!%p1586_p9)
}
  0x35   :  { %27 = dma.hbm_to_vmem [thread:$0]  %s1840_s0, 64, %s25_s16, [#allocation3]  }
  0x36   :  { %s1590_s12 = scalar_lea.hbm %s1843_s3, 2048 }
  0x37   :  { %p1591_p10 = scmp.ne.s32.totalorder %s1843_s3, %s1590_s12  ;;  %p1594_p11 = scmp.lt.u32.totalorder %s1590_s12, %s1843_s3 }
  0x39   :  { %p1596_p12 = pnand %p1594_p11, %p1591_p10 }
  0x3b   :  { %1599 = shalt.err (!%p1596_p12)
}
  0x3c   :  { %s1600_s15 = scalar_lea.vmem %s1756_s18, 2048  ;;  %p1605_p0 = scmp.lt.s32.totalorder %s1756_s18, %s1756_s18 }
  0x3d   :  { %p1601_p13 = scmp.ne.s32.totalorder %s1756_s18, %s1600_s15  ;;  %p1606_p1 = scmp.lt.s32.totalorder %s1600_s15, %s1600_s15 }
  0x3f   :  { %p1607_p2 = por %p1606_p1, %p1605_p0 }
  0x41   :  { %p1608_p3 = pnand %p1607_p2, %p1601_p13 }
  0x43   :  { %1611 = shalt.err (!%p1608_p3)
}
  0x44   :  { %s1672_s0 = smov 128   ;;  %s1673_s16 = smov 8  }
  0x45   :  { %53 = dma.hbm_to_vmem [thread:$0]  %s1843_s3, 2048, %s1756_s18, [#allocation6], %s1672_s0, %s1672_s0, %s1673_s16  }
  0x46   :  { %s1674_s22 = smov [#allocation10]   ;;  %s1612_s27 = scalar_lea.hbm %s1847_s7, 4096 }
  0x47   :  { %s75_s23 = sshll.u32 %s1674_s22, 4  ;;  %p1613_p4 = scmp.ne.s32.totalorder %s1847_s7, %s1612_s27  ;;  %s76_s23 = int_to_ptr.vmem [resolvable:$true] %s75_s23 }
  0x48   :  { %p1616_p5 = scmp.lt.u32.totalorder %s1612_s27, %s1847_s7 }
  0x4a   :  { %p1618_p6 = pnand %p1616_p5, %p1613_p4 }
  0x4c   :  { %1621 = shalt.err (!%p1618_p6)
}
  0x4d   :  { %s1622_s30 = scalar_lea.vmem %s76_s23, 4096  ;;  %p1627_p8 = scmp.lt.s32.totalorder %s76_s23, %s76_s23 }
  0x4e   :  { %p1623_p7 = scmp.ne.s32.totalorder %s76_s23, %s1622_s30  ;;  %p1628_p9 = scmp.lt.s32.totalorder %s1622_s30, %s1622_s30 }
  0x50   :  { %p1629_p10 = por %p1628_p9, %p1627_p8 }
  0x52   :  { %p1630_p11 = pnand %p1629_p10, %p1623_p7 }
  0x54   :  { %1633 = shalt.err (!%p1630_p11)
}
  0x55   :  { %81 = dma.hbm_to_vmem [thread:$0]  %s1847_s7, 4096, %s76_s23, [#allocation9], %s1665_s19, %s1665_s19, %s1666_s20  }
  0x56   :  { %1656 = dma.done.wait [#allocation3], 64  }
  0x57   :  { %1657 = vsyncadd [#allocation3], 4294967232 }
  0x58   :  { %1658 = dma.done.wait [#allocation6], 2304  }
  0x59   :  { %1659 = vsyncadd [#allocation6], 4294964992 }
  0x5a   :  { %1660 = dma.done.wait [#allocation9], 12288  }
  0x5b   :  { %1661 = vsyncadd [#allocation9], 4294955008  ;;  %v1675_v0 = vmov 0.0   ;;  %vm1676_vm0 = vmmov 0   ;;  %v1368_v1 = vld [vmem:[#allocation5] sm:$0xff]   ;;  %v1369_v2 = vld [vmem:[#allocation5 + $0x8] sm:$0xff]  }
  0x5c   :  { %1345 = vmatprep.subr.bf16.mxu0 %v1675_v0  ;;  %1349 = vmatprep.mubr.msk.bf16.mxu0 %vm1676_vm0, %v1675_v0  ;;  %v1370_v3 = vld [vmem:[#allocation7 + $0x4] ss:$8 sps:$4 sm:$0xff]   ;;  %v1372_v4 = vld [vmem:[#allocation7] ss:$8 sps:$4 sm:$0xff]   ;;  %v1373_v5 = vld [vmem:[#allocation7 + $0x14] ss:$8 sps:$4 sm:$0xff]  }
  0x5d   :  { %1346 = vmatpush3.bf16.msra.mxu0 %v1368_v1  ;;  %v100_v6 = vld [vmem:[#allocation2] sm:$0xf]  ;;  %278 = vmatprep.subr.bf16.mxu1 %v1370_v3  ;;  %vm124_vm1 = vcmask 261120   ;;  %v1375_v7 = vld [vmem:[#allocation7 + $0x10] ss:$8 sps:$4 sm:$0xff]   ;;  %v1677_v20 = vmov 0  }
  0x5e   :  { %1347 = vmatprep.subr.bf16.mxu0 %v1675_v0  ;;  %279 = vmatpush1.bf16.msra.mxu1 %v1372_v4  ;;  %v1376_v8 = vld [vmem:[#allocation7 + $0x24] ss:$8 sps:$4 sm:$0xff]   ;;  %v1378_v9 = vld [vmem:[#allocation7 + $0x20] ss:$8 sps:$4 sm:$0xff]   ;;  %v1379_v10 = vld [vmem:[#allocation7 + $0x34] ss:$8 sps:$4 sm:$0xff]  }
  0x5f   :  { %280 = vmatprep.subr.bf16.mxu1 %v1373_v5  ;;  %v1381_v11 = vld [vmem:[#allocation7 + $0x30] ss:$8 sps:$4 sm:$0xff]   ;;  %v1382_v12 = vld [vmem:[#allocation7 + $0x44] ss:$8 sps:$4 sm:$0xff]   ;;  %v1384_v13 = vld [vmem:[#allocation7 + $0x40] ss:$8 sps:$4 sm:$0xff]   ;;  %310 = vmatprep.mubr.bf16.mxu1 %v1677_v20 }
  0x60   :  { %v1385_v14 = vld [vmem:[#allocation7 + $0x54] ss:$8 sps:$4 sm:$0xff]   ;;  %v1387_v15 = vld [vmem:[#allocation7 + $0x50] ss:$8 sps:$4 sm:$0xff]   ;;  %v1388_v16 = vld [vmem:[#allocation7 + $0x64] ss:$8 sps:$4 sm:$0xff]  }
  0x61   :  { %1348 = vmatpush3.bf16.msra.mxu0 %v1369_v2  ;;  %v1390_v17 = vld [vmem:[#allocation7 + $0x60] ss:$8 sps:$4 sm:$0xff]   ;;  %v1391_v18 = vld [vmem:[#allocation7 + $0x74] ss:$8 sps:$4 sm:$0xff]   ;;  %v1393_v19 = vld [vmem:[#allocation7 + $0x70] ss:$8 sps:$4 sm:$0xff]  }
  0x62   :  { %281 = vmatpush1.bf16.msra.mxu1 %v1375_v7  ;;  %v1394_v21 = vld [vmem:[#allocation8] ss:$16 sps:$4 sm:$0xff]   ;;  %v1396_v22 = vld [vmem:[#allocation8 + $0x4] ss:$16 sps:$4 sm:$0xff]   ;;  %v1399_v23 = vld [vmem:[#allocation8 + $0xc] ss:$16 sps:$4 sm:$0xff]  }
  0x63   :  { %282 = vmatprep.subr.bf16.mxu1 %v1376_v8  ;;  %v1402_v24 = vld [vmem:[#allocation8 + $0x24] ss:$16 sps:$4 sm:$0xff]   ;;  %729 = vmatprep.subr.bf16.mxu0 %v1396_v22  ;;  %v1400_v25 = vld [vmem:[#allocation8 + $0x20] ss:$16 sps:$4 sm:$0xff]   ;;  %v1181_v50 = vld [vmem:[%s1842_s2] ss:$0 sm:$0xff] }
  0x64   :  { %1350 = vmatmul.mubr.msk.bf16.vlgmr.msra.gmra.mrb[0].mxu0 %vm124_vm1, %v100_v6  ;;  %v1408_v26 = vld [vmem:[#allocation8 + $0x44] ss:$16 sps:$4 sm:$0xff]   ;;  %v1406_v27 = vld [vmem:[#allocation8 + $0x40] ss:$16 sps:$4 sm:$0xff]   ;;  %v1397_v57 = vld [vmem:[#allocation8 + $0x8] ss:$16 sps:$4 sm:$0xff]  }
  0x65   :  { %730 = vmatpush1.bf16.msra.mxu0 %v1394_v21  ;;  %v1414_v28 = vld [vmem:[#allocation8 + $0x64] ss:$16 sps:$4 sm:$0xff]   ;;  %v1412_v29 = vld [vmem:[#allocation8 + $0x60] ss:$16 sps:$4 sm:$0xff]   ;;  %v1405_v59 = vld [vmem:[#allocation8 + $0x2c] ss:$16 sps:$4 sm:$0xff]  }
  0x66   :  { %283 = vmatpush1.bf16.msra.mxu1 %v1378_v9  ;;  %731 = vmatprep.subr.bf16.mxu0 %v1402_v24  ;;  %v1420_v30 = vld [vmem:[#allocation8 + $0x84] ss:$16 sps:$4 sm:$0xff]   ;;  %v1418_v31 = vld [vmem:[#allocation8 + $0x80] ss:$16 sps:$4 sm:$0xff]   ;;  %v1403_v60 = vld [vmem:[#allocation8 + $0x28] ss:$16 sps:$4 sm:$0xff]  }
  0x67   :  { %284 = vmatprep.subr.bf16.mxu1 %v1379_v10  ;;  %v1426_v32 = vld [vmem:[#allocation8 + $0xa4] ss:$16 sps:$4 sm:$0xff]   ;;  %v1424_v33 = vld [vmem:[#allocation8 + $0xa0] ss:$16 sps:$4 sm:$0xff]   ;;  %v1411_v61 = vld [vmem:[#allocation8 + $0x4c] ss:$16 sps:$4 sm:$0xff]  }
  0x68   :  { %v1432_v34 = vld [vmem:[#allocation8 + $0xc4] ss:$16 sps:$4 sm:$0xff]   ;;  %v1430_v35 = vld [vmem:[#allocation8 + $0xc0] ss:$16 sps:$4 sm:$0xff]   ;;  %v1409_v62 = vld [vmem:[#allocation8 + $0x48] ss:$16 sps:$4 sm:$0xff]  }
  0x69   :  { %732 = vmatpush1.bf16.msra.mxu0 %v1400_v25  ;;  %v1438_v36 = vld [vmem:[#allocation8 + $0xe4] ss:$16 sps:$4 sm:$0xff]   ;;  %v1436_v37 = vld [vmem:[#allocation8 + $0xe0] ss:$16 sps:$4 sm:$0xff]   ;;  %v1417_v63 = vld [vmem:[#allocation8 + $0x6c] ss:$16 sps:$4 sm:$0xff]  }
  0x6a   :  { %285 = vmatpush1.bf16.msra.mxu1 %v1381_v11  ;;  %733 = vmatprep.subr.bf16.mxu0 %v1408_v26  ;;  %v1444_v38 = vld [vmem:[#allocation8 + $0x104] ss:$16 sps:$4 sm:$0xff]   ;;  %v1442_v39 = vld [vmem:[#allocation8 + $0x100] ss:$16 sps:$4 sm:$0xff]   ;;  %v1415_v0 = vld [vmem:[#allocation8 + $0x68] ss:$16 sps:$4 sm:$0xff]  }
  0x6b   :  { %286 = vmatprep.subr.bf16.mxu1 %v1382_v12  ;;  %v1450_v40 = vld [vmem:[#allocation8 + $0x124] ss:$16 sps:$4 sm:$0xff]   ;;  %v1448_v41 = vld [vmem:[#allocation8 + $0x120] ss:$16 sps:$4 sm:$0xff]   ;;  %v1423_v1 = vld [vmem:[#allocation8 + $0x8c] ss:$16 sps:$4 sm:$0xff]  }
  0x6c   :  { %v1456_v42 = vld [vmem:[#allocation8 + $0x144] ss:$16 sps:$4 sm:$0xff]   ;;  %v1454_v43 = vld [vmem:[#allocation8 + $0x140] ss:$16 sps:$4 sm:$0xff]   ;;  %v1421_v2 = vld [vmem:[#allocation8 + $0x88] ss:$16 sps:$4 sm:$0xff]  }
  0x6d   :  { %734 = vmatpush1.bf16.msra.mxu0 %v1406_v27  ;;  %v1462_v44 = vld [vmem:[#allocation8 + $0x164] ss:$16 sps:$4 sm:$0xff]   ;;  %v1460_v45 = vld [vmem:[#allocation8 + $0x160] ss:$16 sps:$4 sm:$0xff]   ;;  %v1429_v3 = vld [vmem:[#allocation8 + $0xac] ss:$16 sps:$4 sm:$0xff]  }
  0x6e   :  { %287 = vmatpush1.bf16.msra.mxu1 %v1384_v13  ;;  %735 = vmatprep.subr.bf16.mxu0 %v1414_v28  ;;  %v1468_v46 = vld [vmem:[#allocation8 + $0x184] ss:$16 sps:$4 sm:$0xff]   ;;  %v1466_v47 = vld [vmem:[#allocation8 + $0x180] ss:$16 sps:$4 sm:$0xff]   ;;  %v1427_v4 = vld [vmem:[#allocation8 + $0xa8] ss:$16 sps:$4 sm:$0xff]  }
  0x6f   :  { %288 = vmatprep.subr.bf16.mxu1 %v1385_v14  ;;  %v1474_v48 = vld [vmem:[#allocation8 + $0x1a4] ss:$16 sps:$4 sm:$0xff]   ;;  %v1472_v49 = vld [vmem:[#allocation8 + $0x1a0] ss:$16 sps:$4 sm:$0xff]   ;;  %v1435_v5 = vld [vmem:[#allocation8 + $0xcc] ss:$16 sps:$4 sm:$0xff]  }
  0x70   :  { %v1433_v6 = vld [vmem:[#allocation8 + $0xc8] ss:$16 sps:$4 sm:$0xff]   ;;  %v1441_v7 = vld [vmem:[#allocation8 + $0xec] ss:$16 sps:$4 sm:$0xff]   ;;  %v1480_v21 = vld [vmem:[#allocation8 + $0x1c4] ss:$16 sps:$4 sm:$0xff]  }
  0x71   :  { %736 = vmatpush1.bf16.msra.mxu0 %v1412_v29  ;;  %v1439_v8 = vld [vmem:[#allocation8 + $0xe8] ss:$16 sps:$4 sm:$0xff]   ;;  %v1447_v9 = vld [vmem:[#allocation8 + $0x10c] ss:$16 sps:$4 sm:$0xff]   ;;  %v1486_v25 = vld [vmem:[#allocation8 + $0x1e4] ss:$16 sps:$4 sm:$0xff]  }
  0x72   :  { %289 = vmatpush1.bf16.msra.mxu1 %v1387_v15  ;;  %737 = vmatprep.subr.bf16.mxu0 %v1420_v30  ;;  %v1445_v10 = vld [vmem:[#allocation8 + $0x108] ss:$16 sps:$4 sm:$0xff]   ;;  %v1453_v11 = vld [vmem:[#allocation8 + $0x12c] ss:$16 sps:$4 sm:$0xff]   ;;  %v1484_v27 = vld [vmem:[#allocation8 + $0x1e0] ss:$16 sps:$4 sm:$0xff]  }
  0x73   :  { %290 = vmatprep.subr.bf16.mxu1 %v1388_v16  ;;  %v1451_v12 = vld [vmem:[#allocation8 + $0x128] ss:$16 sps:$4 sm:$0xff]   ;;  %v1459_v13 = vld [vmem:[#allocation8 + $0x14c] ss:$16 sps:$4 sm:$0xff]   ;;  %v1490_v29 = vld [vmem:[#allocation10 + $0x40] sm:$0xff]   ;;  %s1678_s1 = smov [#allocation11]  }
  0x74   :  { %v1457_v14 = vld [vmem:[#allocation8 + $0x148] ss:$16 sps:$4 sm:$0xff]   ;;  %v1465_v15 = vld [vmem:[#allocation8 + $0x16c] ss:$16 sps:$4 sm:$0xff]   ;;  %v1491_v30 = vld [vmem:[#allocation10 + $0xc0] sm:$0xff]   ;;  %s1170_s10 = sshll.u32 %s1678_s1, 4  ;;  %s1171_s10 = int_to_ptr.vmem [resolvable:$true] %s1170_s10 }
  0x75   :  { %738 = vmatpush1.bf16.msra.mxu0 %v1418_v31  ;;  %v1463_v16 = vld [vmem:[#allocation8 + $0x168] ss:$16 sps:$4 sm:$0xff]   ;;  %v1483_v22 = vld [vmem:[#allocation8 + $0x1cc] ss:$16 sps:$4 sm:$0xff]   ;;  %v188_v31 = vlaneseq  ;;  %s1634_s13 = scalar_lea.vmem %s1171_s10, 128  ;;  %p1639_p13 = scmp.lt.s32.totalorder %s1171_s10, %s1171_s10 }
  0x76   :  { %291 = vmatpush1.bf16.msra.mxu1 %v1390_v17  ;;  %739 = vmatprep.subr.bf16.mxu0 %v1426_v32  ;;  %v1471_v17 = vld [vmem:[#allocation8 + $0x18c] ss:$16 sps:$4 sm:$0xff]   ;;  %v1475_v20 = vld [vmem:[#allocation8 + $0x1a8] ss:$16 sps:$4 sm:$0xff]   ;;  %p1635_p12 = scmp.ne.s32.totalorder %s1171_s10, %s1634_s13  ;;  %p1640_p0 = scmp.lt.s32.totalorder %s1634_s13, %s1634_s13 }
  0x77   :  { %292 = vmatprep.subr.bf16.mxu1 %v1391_v18  ;;  %v1469_v18 = vld [vmem:[#allocation8 + $0x188] ss:$16 sps:$4 sm:$0xff]   ;;  %v1489_v26 = vld [vmem:[#allocation8 + $0x1ec] ss:$16 sps:$4 sm:$0xff]   ;;  %v1805_v32 = vshrl.u32 %v188_v31, 7 }
  0x78   :  { %v1481_v24 = vld [vmem:[#allocation8 + $0x1c8] ss:$16 sps:$4 sm:$0xff]   ;;  %p1641_p1 = por %p1640_p0, %p1639_p13 }
  0x79   :  { %740 = vmatpush1.bf16.msra.mxu0 %v1424_v33  ;;  %v1487_v28 = vld [vmem:[#allocation8 + $0x1e8] ss:$16 sps:$4 sm:$0xff]   ;;  %v190_v33 = vsub.s32 0, %v1805_v32 }
  0x7a   :  { %293 = vmatpush1.bf16.msra.mxu1 %v1393_v19  ;;  %741 = vmatprep.subr.bf16.mxu0 %v1432_v34  ;;  %v1477_v19 = vld [vmem:[#allocation8 + $0x1ac] ss:$16 sps:$4 sm:$0xff]   ;;  %p1642_p2 = pnand %p1641_p1, %p1635_p12 }
  0x7b   :  { %770 = vmatprep.subr.bf16.mxu1 %v1399_v23  ;;  %v1478_v23 = vld [vmem:[#allocation8 + $0x1c0] ss:$16 sps:$4 sm:$0xff]   ;;  %v186_v34 = vld [vmem:[%s1844_s4] sm:$0x3] }
  0x7d   :  { %742 = vmatpush1.bf16.msra.mxu0 %v1430_v35  ;;  %v194_v35 = vsub.s32 1, %v1805_v32 }
  0x7e   :  { %743 = vmatprep.subr.bf16.mxu0 %v1438_v36  ;;  %v191_v36 = vrot.slane %v186_v34, %v190_v33 }
  0x81   :  { %744 = vmatpush1.bf16.msra.mxu0 %v1436_v37  ;;  %v195_v37 = vrot.slane %v186_v34, %v194_v35 }
  0x82   :  { %745 = vmatprep.subr.bf16.mxu0 %v1444_v38 }
  0x85   :  { %746 = vmatpush1.bf16.msra.mxu0 %v1442_v39 }
  0x86   :  { %747 = vmatprep.subr.bf16.mxu0 %v1450_v40 }
  0x89   :  { %748 = vmatpush1.bf16.msra.mxu0 %v1448_v41 }
  0x8a   :  { %749 = vmatprep.subr.bf16.mxu0 %v1456_v42 }
  0x8d   :  { %750 = vmatpush1.bf16.msra.mxu0 %v1454_v43 }
  0x8e   :  { %751 = vmatprep.subr.bf16.mxu0 %v1462_v44 }
  0x91   :  { %752 = vmatpush1.bf16.msra.mxu0 %v1460_v45 }
  0x92   :  { %753 = vmatprep.subr.bf16.mxu0 %v1468_v46 }
  0x95   :  { %754 = vmatpush1.bf16.msra.mxu0 %v1466_v47  ;;  %v1492_v47 = vld [vmem:[#allocation10] sm:$0xff]  }
  0x96   :  { %755 = vmatprep.subr.bf16.mxu0 %v1474_v48  ;;  %v1493_v48 = vld [vmem:[#allocation10 + $0x80] sm:$0xff]  }
  0x99   :  { %756 = vmatpush1.bf16.msra.mxu0 %v1472_v49 }
  0x9a   :  { %757 = vmatprep.subr.bf16.mxu0 %v1480_v21 }
  0x9d   :  { %758 = vmatpush1.bf16.msra.mxu0 %v1478_v23 }
  0x9e   :  { %759 = vmatprep.subr.bf16.mxu0 %v1486_v25 }
  0xa1   :  { %760 = vmatpush1.bf16.msra.mxu0 %v1484_v27 }
  0xa2   :  { %1301 = vmatprep.subr.bf16.mxu0 %v1490_v29 }
 0x137   :  { %v162_v51 = vpop.f32.mrb[0].mxu0 }
 0x138   :  { %v163_v52 = vadd.f32 %v1181_v50, %v162_v51  ;;  %v1351_v53 = vpop.f32.mrb[1].mxu0  ;;  %v1494_v50 = vld [vmem:[#allocation10 + $0x48] sm:$0xff]  }
 0x139   :  { %v165_v54 = vpop.f32.mrb[2].mxu0  ;;  %v1495_v51 = vld [vmem:[#allocation10 + $0xc8] sm:$0xff]  }
 0x13a   :  { %v168_v55 = vmax.f32 %v163_v52, 0.0  ;;  %v1352_v56 = vpop.f32.mrb[3].mxu0  ;;  %v1496_v52 = vld [vmem:[#allocation10 + $0x8] sm:$0xff]   ;;  %v1498_v54 = vld [vmem:[#allocation10 + $0x50] sm:$0xff]  }
 0x13b   :  { %v1497_v53 = vld [vmem:[#allocation10 + $0x88] sm:$0xff]   ;;  %v1500_v56 = vld [vmem:[#allocation10 + $0x10] sm:$0xff]  }
 0x13c   :  { %v169_v58 = vpack.c.bf16 %v168_v55, %v168_v55  ;;  %v1499_v55 = vld [vmem:[#allocation10 + $0xd0] sm:$0xff]  }
 0x13e   :  { %311 = vmatmul.mubr.bf16.vlgmr.msra.gmra.mrb[0].mxu1 %v169_v58  ;;  %v1502_v58 = vld [vmem:[#allocation10 + $0x58] sm:$0xff]  }
 0x13f   :  { %771 = vmatpush1.bf16.msra.mxu1 %v1397_v57  ;;  %v1501_v57 = vld [vmem:[#allocation10 + $0x90] sm:$0xff]  }
 0x140   :  { %772 = vmatprep.subr.bf16.mxu1 %v1405_v59  ;;  %v1503_v59 = vld [vmem:[#allocation10 + $0xd8] sm:$0xff]  }
 0x143   :  { %773 = vmatpush1.bf16.msra.mxu1 %v1403_v60  ;;  %v1504_v60 = vld [vmem:[#allocation10 + $0x18] sm:$0xff]  }
 0x144   :  { %774 = vmatprep.subr.bf16.mxu1 %v1411_v61  ;;  %v1505_v61 = vld [vmem:[#allocation10 + $0x98] sm:$0xff]  }
 0x147   :  { %775 = vmatpush1.bf16.msra.mxu1 %v1409_v62  ;;  %v1506_v62 = vld [vmem:[#allocation10 + $0x60] sm:$0xff]  }
 0x148   :  { %776 = vmatprep.subr.bf16.mxu1 %v1417_v63  ;;  %v1507_v63 = vld [vmem:[#allocation10 + $0xe0] sm:$0xff]  }
 0x14b   :  { %777 = vmatpush1.bf16.msra.mxu1 %v1415_v0  ;;  %v1508_v0 = vld [vmem:[#allocation10 + $0x20] sm:$0xff]  }
 0x14c   :  { %778 = vmatprep.subr.bf16.mxu1 %v1423_v1  ;;  %v1509_v1 = vld [vmem:[#allocation10 + $0xa0] sm:$0xff]  }
 0x14f   :  { %779 = vmatpush1.bf16.msra.mxu1 %v1421_v2  ;;  %v1510_v2 = vld [vmem:[#allocation10 + $0x68] sm:$0xff]  }
 0x150   :  { %780 = vmatprep.subr.bf16.mxu1 %v1429_v3  ;;  %v1511_v3 = vld [vmem:[#allocation10 + $0xe8] sm:$0xff]  }
 0x153   :  { %781 = vmatpush1.bf16.msra.mxu1 %v1427_v4  ;;  %v1512_v4 = vld [vmem:[#allocation10 + $0x28] sm:$0xff]  }
 0x154   :  { %782 = vmatprep.subr.bf16.mxu1 %v1435_v5  ;;  %v1513_v5 = vld [vmem:[#allocation10 + $0xa8] sm:$0xff]  }
 0x157   :  { %783 = vmatpush1.bf16.msra.mxu1 %v1433_v6  ;;  %v1514_v6 = vld [vmem:[#allocation10 + $0x70] sm:$0xff]  }
 0x158   :  { %784 = vmatprep.subr.bf16.mxu1 %v1441_v7  ;;  %v1515_v7 = vld [vmem:[#allocation10 + $0xf0] sm:$0xff]  }
 0x15b   :  { %785 = vmatpush1.bf16.msra.mxu1 %v1439_v8  ;;  %v1516_v8 = vld [vmem:[#allocation10 + $0x30] sm:$0xff]  }
 0x15c   :  { %786 = vmatprep.subr.bf16.mxu1 %v1447_v9  ;;  %v1517_v9 = vld [vmem:[#allocation10 + $0xb0] sm:$0xff]  }
 0x15f   :  { %787 = vmatpush1.bf16.msra.mxu1 %v1445_v10  ;;  %v1518_v10 = vld [vmem:[#allocation10 + $0x78] sm:$0xff]  }
 0x160   :  { %788 = vmatprep.subr.bf16.mxu1 %v1453_v11  ;;  %v1519_v11 = vld [vmem:[#allocation10 + $0xf8] sm:$0xff]  }
 0x163   :  { %789 = vmatpush1.bf16.msra.mxu1 %v1451_v12  ;;  %v1520_v12 = vld [vmem:[#allocation10 + $0x38] sm:$0xff]  }
 0x164   :  { %790 = vmatprep.subr.bf16.mxu1 %v1459_v13  ;;  %v1521_v13 = vld [vmem:[#allocation10 + $0xb8] sm:$0xff]  }
 0x167   :  { %791 = vmatpush1.bf16.msra.mxu1 %v1457_v14  ;;  %v399_v14 = vsub.s32 2, %v1805_v32 }
 0x168   :  { %792 = vmatprep.subr.bf16.mxu1 %v1465_v15  ;;  %v387_v15 = vld [vmem:[%s1846_s6] sm:$0xf] }
 0x16b   :  { %793 = vmatpush1.bf16.msra.mxu1 %v1463_v16  ;;  %v403_v16 = vsub.s32 3, %v1805_v32 }
 0x16c   :  { %794 = vmatprep.subr.bf16.mxu1 %v1471_v17  ;;  %v392_v17 = vrot.slane %v387_v15, %v190_v33 }
 0x16f   :  { %795 = vmatpush1.bf16.msra.mxu1 %v1469_v18  ;;  %v400_v18 = vrot.slane %v387_v15, %v399_v14 }
 0x170   :  { %796 = vmatprep.subr.bf16.mxu1 %v1477_v19  ;;  %v396_v19 = vrot.slane %v387_v15, %v194_v35 }
 0x173   :  { %797 = vmatpush1.bf16.msra.mxu1 %v1475_v20  ;;  %v404_v20 = vrot.slane %v387_v15, %v403_v16 }
 0x174   :  { %798 = vmatprep.subr.bf16.mxu1 %v1483_v22 }
 0x177   :  { %799 = vmatpush1.bf16.msra.mxu1 %v1481_v24 }
 0x178   :  { %800 = vmatprep.subr.bf16.mxu1 %v1489_v26 }
 0x17b   :  { %801 = vmatpush1.bf16.msra.mxu1 %v1487_v28 }
 0x17c   :  { %1323 = vmatprep.subr.bf16.mxu1 %v1491_v30 }
 0x211   :  { %v312_v38 = vpop.f32.mrb[0].mxu1 }
 0x212   :  { %v313_v39 = vadd.f32 %v312_v38, %v191_v36  ;;  %v314_v40 = vpop.f32.mrb[1].mxu1 }
 0x213   :  { %v315_v41 = vadd.f32 %v314_v40, %v195_v37  ;;  %v316_v42 = vpop.f32.mrb[2].mxu1 }
 0x214   :  { %v319_v43 = vmax.f32 %v313_v39, 0.0  ;;  %v317_v44 = vpop.f32.mrb[3].mxu1 }
 0x215   :  { %v320_v45 = vmax.f32 %v315_v41, 0.0 }
 0x216   :  { %v321_v49 = vpack.c.bf16 %v319_v43, %v319_v43  ;;  %v1265_v43 = vld [vmem:[%s1848_s8] ss:$0 sm:$0xff] }
 0x217   :  { %v322_v46 = vpack.c.bf16 %v320_v45, %v320_v45 }
 0x219   :  { %761 = vmatprep.mubr.bf16.mxu0 %v322_v46  ;;  %802 = vmatprep.mubr.bf16.mxu1 %v322_v46 }
 0x21a   :  { %762 = vmatmul.mubr.bf16.vlgmr.msra.gmra.mrb[4].mxu0 %v321_v49  ;;  %803 = vmatmul.mubr.bf16.vlgmr.msra.gmra.mrb[4].mxu1 %v321_v49 }
 0x21b   :  { %1302 = vmatpush3.bf16.msra.mxu0 %v1492_v47  ;;  %1324 = vmatpush3.bf16.msra.mxu1 %v1493_v48 }
 0x21c   :  { %1303 = vmatprep.subr.bf16.mxu0 %v1494_v50  ;;  %1325 = vmatprep.subr.bf16.mxu1 %v1495_v51 }
 0x21f   :  { %1304 = vmatpush3.bf16.msra.mxu0 %v1496_v52  ;;  %1326 = vmatpush3.bf16.msra.mxu1 %v1497_v53 }
 0x220   :  { %1305 = vmatprep.subr.bf16.mxu0 %v1498_v54  ;;  %1327 = vmatprep.subr.bf16.mxu1 %v1499_v55 }
 0x223   :  { %1306 = vmatpush3.bf16.msra.mxu0 %v1500_v56  ;;  %1328 = vmatpush3.bf16.msra.mxu1 %v1501_v57 }
 0x224   :  { %1307 = vmatprep.subr.bf16.mxu0 %v1502_v58  ;;  %1329 = vmatprep.subr.bf16.mxu1 %v1503_v59 }
 0x227   :  { %1308 = vmatpush3.bf16.msra.mxu0 %v1504_v60  ;;  %1330 = vmatpush3.bf16.msra.mxu1 %v1505_v61 }
 0x228   :  { %1309 = vmatprep.subr.bf16.mxu0 %v1506_v62  ;;  %1331 = vmatprep.subr.bf16.mxu1 %v1507_v63 }
 0x22b   :  { %1310 = vmatpush3.bf16.msra.mxu0 %v1508_v0  ;;  %1332 = vmatpush3.bf16.msra.mxu1 %v1509_v1 }
 0x22c   :  { %1311 = vmatprep.subr.bf16.mxu0 %v1510_v2  ;;  %1333 = vmatprep.subr.bf16.mxu1 %v1511_v3 }
 0x22f   :  { %1312 = vmatpush3.bf16.msra.mxu0 %v1512_v4  ;;  %1334 = vmatpush3.bf16.msra.mxu1 %v1513_v5 }
 0x230   :  { %1313 = vmatprep.subr.bf16.mxu0 %v1514_v6  ;;  %1335 = vmatprep.subr.bf16.mxu1 %v1515_v7 }
 0x233   :  { %1314 = vmatpush3.bf16.msra.mxu0 %v1516_v8  ;;  %1336 = vmatpush3.bf16.msra.mxu1 %v1517_v9 }
 0x234   :  { %1315 = vmatprep.subr.bf16.mxu0 %v1518_v10  ;;  %1337 = vmatprep.subr.bf16.mxu1 %v1519_v11 }
 0x237   :  { %1316 = vmatpush3.bf16.msra.mxu0 %v1520_v12  ;;  %1338 = vmatpush3.bf16.msra.mxu1 %v1521_v13 }
 0x2ed   :  { %v763_v21 = vpop.f32.mrb[4].mxu0  ;;  %v804_v22 = vpop.f32.mrb[4].mxu1 }
 0x2ee   :  { %v764_v23 = vadd.f32 %v763_v21, %v392_v17  ;;  %v805_v24 = vadd.f32 %v804_v22, %v400_v18  ;;  %v765_v25 = vpop.f32.mrb[5].mxu0  ;;  %v806_v26 = vpop.f32.mrb[5].mxu1 }
 0x2ef   :  { %v766_v27 = vadd.f32 %v765_v25, %v396_v19  ;;  %v807_v28 = vadd.f32 %v806_v26, %v404_v20  ;;  %v767_v29 = vpop.f32.mrb[6].mxu0  ;;  %v808_v30 = vpop.f32.mrb[6].mxu1 }
 0x2f0   :  { %v811_v31 = vmax.f32 %v764_v23, 0.0  ;;  %v813_v34 = vmax.f32 %v805_v24, 0.0  ;;  %v768_v36 = vpop.f32.mrb[7].mxu0  ;;  %v809_v37 = vpop.f32.mrb[7].mxu1 }
 0x2f1   :  { %v812_v33 = vmax.f32 %v766_v27, 0.0  ;;  %v814_v38 = vmax.f32 %v807_v28, 0.0 }
 0x2f2   :  { %v815_v35 = vpack.c.bf16 %v811_v31, %v811_v31  ;;  %v817_v40 = vpack.c.bf16 %v813_v34, %v813_v34 }
 0x2f3   :  { %v816_v39 = vpack.c.bf16 %v812_v33, %v812_v33  ;;  %v818_v32 = vpack.c.bf16 %v814_v38, %v814_v38 }
 0x2f5   :  { %1114 = vmatprep.mubr.bf16.mxu0 %v816_v39  ;;  %1154 = vmatprep.mubr.bf16.mxu1 %v818_v32 }
 0x2f6   :  { %1115 = vmatmul.mubr.bf16.vlgmr.msra.gmra.mrb[8].mxu0 %v815_v35  ;;  %1155 = vmatmul.mubr.bf16.vlgmr.msra.gmra.mrb[8].mxu1 %v817_v40 }
 0x3c9   :  { %v1317_v41 = vpop.f32.mrb[8].mxu0  ;;  %v1339_v42 = vpop.f32.mrb[8].mxu1 }
 0x3ca   :  { %v1318_v44 = vpop.f32.mrb[9].mxu0  ;;  %v1340_v45 = vpop.f32.mrb[9].mxu1 }
 0x3cb   :  { %v1319_v46 = vadd.f32 %v1318_v44, %v1317_v41  ;;  %v1341_v47 = vadd.f32 %v1340_v45, %v1339_v42  ;;  %v1320_v48 = vpop.f32.mrb[10].mxu0  ;;  %v1342_v49 = vpop.f32.mrb[10].mxu1 }
 0x3cc   :  { %v1321_v50 = vpop.f32.mrb[11].mxu0  ;;  %v1343_v51 = vpop.f32.mrb[11].mxu1 }
 0x3cd   :  { %v1117_v52 = vadd.f32 %v1319_v46, %v1265_v43 }
 0x3cf   :  { %v1157_v53 = vadd.f32 %v1341_v47, %v1117_v52 }
 0x3d1   :  { %1522 = vtanh.f32 %v1157_v53 }
 0x3db   :  { %v1523_v54 = vpop.eup %1522 }
 0x3dc   :  { %1163 = vst [vmem:[#allocation11] sm:$0xff] %v1523_v54 }
 0x3dd   :  { %1645 = shalt.err (!%p1642_p2)
}
 0x3de   :  { %s1646_s15 = scalar_lea.hbm %s1849_s9, 128 }
 0x3df   :  { %p1647_p3 = scmp.ne.s32.totalorder %s1849_s9, %s1646_s15  ;;  %p1650_p4 = scmp.lt.u32.totalorder %s1646_s15, %s1849_s9 }
 0x3e1   :  { %p1652_p5 = pnand %p1650_p4, %p1647_p3 }
 0x3e3   :  { %1655 = shalt.err (!%p1652_p5)
}
 0x3e4   :  { %1173 = dma.vmem_to_hbm [thread:$0]  %s1171_s10, 128, %s1849_s9, [#allocation4]  }
 0x3e5   :  { %1662 = dma.done.wait [#allocation4], 128  }
 0x3e6   :  { %1663 = vsyncadd [#allocation4], 4294967168 }
 0x3e7   :  { %1177 = vsyncpa [#allocation3], 1 }
 0x3e8   :  { %1178 = vsyncpa [#allocation6], 1 }
 0x3e9   :  { %1179 = vsyncpa [#allocation9], 1 }
 0x3ea   :  { %1180 = vsyncpa [#allocation4], 1 }

</bundles_post_ra>
